<compile_context>
chip_gen: v6e
topology: v6e:2x2x1
jax: 0.10.0
libtpu: 0.0.40
codegen_flags: <defaults>
</compile_context>

<pallas_src>
import jax
import jax.numpy as jnp
from jax.experimental import pallas as pl
from jax.experimental.pallas import tpu as pltpu


def _round_up(x, m):
    return ((x + m - 1) // m) * m


def _gcn_body(rhs_ref, adj_ref, w_ref, b_ref, o_ref, acc_ref, *,
              nb, fp, tk, rhs_resident, mm_dtype):
    """Shared kernel body.

    rhs_ref : [Np, B*fp] (resident) or [tk, B*fp] (k-tiled), compute dtype
    adj_ref : [TM, tk]                                        compute dtype
    w_ref   : [fp, FpO] compute dtype, or None (W was pre-applied in wrapper)
    b_ref   : [1, FpO]  f32
    o_ref   : [B, TM, FpO] f32
    acc_ref : [TM, B*fp] f32 scratch, resident across the k axis
    """
    kc = pl.program_id(1)

    if rhs_resident:
        k0 = pl.multiple_of(kc * tk, tk)
        rhs_tile = rhs_ref[pl.ds(k0, tk), :]
    else:
        rhs_tile = rhs_ref[...]

    # Big matmul: [TM, tk] @ [tk, B*fp] -> [TM, B*fp]  (MXU, f32 accumulation)
    part = jnp.dot(adj_ref[...], rhs_tile, preferred_element_type=jnp.float32)

    @pl.when(kc == 0)
    def _():
        acc_ref[...] = part            # direct write: no zero-fill + add

    @pl.when(kc > 0)
    def _():
        acc_ref[...] += part

    @pl.when(kc == pl.num_programs(1) - 1)
    def _():
        for b in range(nb):            # static unroll over batch lane-slabs
            slab = acc_ref[:, b * fp:(b + 1) * fp]
            if w_ref is not None:
                # Finalize matmul, once per (row tile, batch): [TM,fp]@[fp,FpO]
                slab = jnp.dot(slab.astype(mm_dtype), w_ref[...],
                               preferred_element_type=jnp.float32)
            o_ref[b] = (slab + b_ref[...]).astype(o_ref.dtype)


def graph_convolution_forward(x, adj, weight, bias=None, *,
                              compute_dtype=jnp.bfloat16,
                              tile_n=512,
                              rhs_vmem_budget_bytes=12 * 1024 * 1024):
    """GraphConvolution forward.

    x:      [B, N, Fin] (or [N, Fin]);  adj: [N, N]
    weight: [Fin, Fout];  bias: [Fout] or None
    compute_dtype: MXU input dtype (bf16 default; use jnp.float32 for tighter
                   numerics at ~3-6x MXU cost).
    returns [B, N, Fout] float32 (or [N, Fout] if x was 2-D)
    """
    squeeze_batch = (x.ndim == 2)
    if squeeze_batch:
        x = x[None]
    B, N, Fin = x.shape
    Fin_w, Fout = weight.shape
    assert Fin_w == Fin and adj.shape == (N, N)

    compute_dtype = jnp.dtype(compute_dtype)
    f32 = jnp.float32

    # ---- association selection: contract adj against min(Fin, Fout) --------
    pre_apply_w = Fout < Fin
    if pre_apply_w:
        # Thin matmul in the wrapper (negligible vs the N^2 stream).
        rhs = jnp.einsum("bnf,fo->bno", x.astype(f32), weight.astype(f32),
                         precision=jax.lax.Precision.HIGHEST)
        F = Fout
    else:
        rhs = x.astype(f32)
        F = Fin

    # ---- tiling / padding (never fall back to a whole-matrix block) --------
    if N <= tile_n:
        TM = TK = _round_up(N, 128)          # single tile covers padded N
    else:
        TM = TK = _round_up(tile_n, 128)
    Np = _round_up(N, TM)

    Fp = _round_up(F, 128)        # per-batch lane slab inside the big matmul
    FpO = _round_up(Fout, 128)    # per-batch lane slab of the output

    # ---- fold batch into lanes: rhs -> [Np, B*Fp]  (adj read once total) ----
    rhs_folded = jnp.zeros((Np, B, Fp), f32)
    rhs_folded = rhs_folded.at[:N, :, :F].set(jnp.transpose(rhs, (1, 0, 2)))
    rhs_folded = rhs_folded.reshape(Np, B * Fp).astype(compute_dtype)

    adj_p = jnp.zeros((Np, Np), f32).at[:N, :N].set(adj.astype(f32))
    adj_p = adj_p.astype(compute_dtype)

    b_vec = jnp.zeros((Fout,), f32) if bias is None else bias.astype(f32)
    bias_p = jnp.zeros((1, FpO), f32).at[0, :Fout].set(b_vec)

    w_p = None
    w_bytes = 0
    if not pre_apply_w:
        w_p = (jnp.zeros((Fp, FpO), f32)
               .at[:Fin, :Fout].set(weight.astype(f32)).astype(compute_dtype))
        w_bytes = Fp * FpO * compute_dtype.itemsize

    grid = (Np // TM, Np // TK)
    n_k = grid[1]

    itemsize = compute_dtype.itemsize
    rhs_bytes = Np * B * Fp * itemsize
    # Keep the whole rhs slab resident in VMEM when it fits the budget, so it
    # is not re-DMA'd once per row tile.
    rhs_resident = (n_k == 1) or (rhs_bytes <= rhs_vmem_budget_bytes)

    kernel_kw = dict(nb=B, fp=Fp, tk=TK, rhs_resident=rhs_resident,
                     mm_dtype=compute_dtype)
    if pre_apply_w:
        def kernel(rhs_ref, adj_ref, b_ref, o_ref, acc_ref):
            _gcn_body(rhs_ref, adj_ref, None, b_ref, o_ref, acc_ref,
                      **kernel_kw)
    else:
        def kernel(rhs_ref, adj_ref, w_ref, b_ref, o_ref, acc_ref):
            _gcn_body(rhs_ref, adj_ref, w_ref, b_ref, o_ref, acc_ref,
                      **kernel_kw)

    # ---- VMEM budget (blocks incl. pipelining buffers) ----------------------
    vmem_est = (
        2 * TM * TK * itemsize                                    # adj stream
        + (rhs_bytes if rhs_resident else 2 * TK * B * Fp * itemsize)
        + w_bytes + FpO * 4                                       # W + bias
        + 2 * B * TM * FpO * 4                                    # output
        + TM * B * Fp * 4                                         # f32 acc
    )
    vmem_limit = int(min(max(int(vmem_est * 1.5) + (4 << 20), 32 << 20),
                         128 << 20))

    def run(single_buffer):
        def const_spec(shape):
            # Constant block index -> fetched exactly once; Buffered(1) drops
            # the (unused) second pipeline buffer as well.
            if single_buffer:
                return pl.BlockSpec(shape, lambda i, k: (0,) * len(shape),
                                    pipeline_mode=pl.Buffered(1))
            return pl.BlockSpec(shape, lambda i, k: (0,) * len(shape))

        if rhs_resident:
            rhs_spec = const_spec((Np, B * Fp))
        else:
            rhs_spec = pl.BlockSpec((TK, B * Fp), lambda i, k: (k, 0))
        adj_spec = pl.BlockSpec((TM, TK), lambda i, k: (i, k))

        in_specs = [rhs_spec, adj_spec]
        inputs = [rhs_folded, adj_p]
        if not pre_apply_w:
            in_specs.append(const_spec((Fp, FpO)))
            inputs.append(w_p)
        in_specs.append(const_spec((1, FpO)))
        inputs.append(bias_p)

        return pl.pallas_call(
            kernel,
            out_shape=jax.ShapeDtypeStruct((B, Np, FpO), f32),
            grid_spec=pltpu.PrefetchScalarGridSpec(
                num_scalar_prefetch=0,
                grid=grid,
                in_specs=in_specs,
                out_specs=pl.BlockSpec((B, TM, FpO), lambda i, k: (0, i, 0)),
                scratch_shapes=[pltpu.VMEM((TM, B * Fp), f32)],
            ),
            compiler_params=pltpu.CompilerParams(
                dimension_semantics=("parallel", "arbitrary"),
                vmem_limit_bytes=vmem_limit,
            ),
        )(*inputs)

    try:
        out_padded = run(single_buffer=True)
    except Exception:
        # pl.Buffered(1) is a pure VMEM-footprint optimization (these operands
        # are DMA'd once either way because their block index is constant);
        # fall back to default double buffering if this JAX/Mosaic build
        # rejects single-buffered pipeline_mode on pallas_call BlockSpecs.
        out_padded = run(single_buffer=False)

    out = out_padded[:, :N, :Fout]
    return out[0] if squeeze_batch else out


def _reference(x, adj, weight, bias):
    support = jnp.matmul(x, weight, precision=jax.lax.Precision.HIGHEST)
    output = jnp.matmul(adj, support, precision=jax.lax.Precision.HIGHEST)
    return output if bias is None else output + bias


if __name__ == "__main__":
    root = jax.random.PRNGKey(0)

    def make_case(seed, B, N, Fin, Fout, with_bias=True):
        kx, ka, kw = jax.random.split(jax.random.fold_in(root, seed), 3)
        shape = (N, Fin) if B is None else (B, N, Fin)
        x = jax.random.normal(kx, shape, dtype=jnp.float32)
        adj = jax.random.uniform(ka, (N, N), dtype=jnp.float32)
        adj = 0.5 * (adj + adj.T)                         # symmetric adjacency
        xav_std = (2.0 / (Fin + Fout)) ** 0.5             # xavier_normal_
        w = xav_std * jax.random.normal(kw, (Fin, Fout), dtype=jnp.float32)
        b = jnp.full((Fout,), 0.1, dtype=jnp.float32) if with_bias else None
        return x, adj, w, b

    def check(tag, x, adj, w, b, rel_tol, **kw):
        out = graph_convolution_forward(x, adj, w, b, **kw)
        jax.block_until_ready(out)
        ref = _reference(x, adj, w, b)
        assert out.shape == ref.shape, (tag, out.shape, ref.shape)
        err = float(jnp.max(jnp.abs(out - ref)))
        tol = 1e-3 + rel_tol * float(jnp.max(jnp.abs(ref)))
        assert err <= tol, (tag, err, tol)

    # 1) module demo shape: Fin < Fout -> (adj @ x) @ W path, resident rhs.
    x, adj, w, b = make_case(1, 2, 16, 8, 32)
    check("fin<fout bf16", x, adj, w, b, rel_tol=2e-2)
    # 2) same shape on the float32 compute path (precision knob).
    check("fin<fout f32", x, adj, w, b, rel_tol=5e-3,
          compute_dtype=jnp.float32)
    # 3) Fout < Fin -> support pre-applied in the wrapper; no bias.
    x, adj, w, b = make_case(2, 2, 16, 32, 8, with_bias=False)
    check("fout<fin", x, adj, w, b, rel_tol=2e-2)
    # 4) non-divisible N: padding, multi-tile k accumulation, k-tiled rhs.
    x, adj, w, b = make_case(3, 2, 300, 8, 24)
    check("padded N", x, adj, w, b, rel_tol=2e-2,
          tile_n=128, rhs_vmem_budget_bytes=0)
    # 5) un-batched 2-D x.
    x, adj, w, b = make_case(4, None, 16, 32, 8)
    check("2d x", x, adj, w, b, rel_tol=2e-2)

    print("KERNEL_OK")
</pallas_src>

<mosaic_0001>
module attributes {stable_mosaic.version = 11 : i64} {
  func.func @kernel(%arg0: i32, %arg1: i32, %arg2: memref<128x256xbf16, #tpu.memory_space<vmem>>, %arg3: memref<128x128xbf16, #tpu.memory_space<vmem>>, %arg4: memref<128x128xbf16, #tpu.memory_space<vmem>>, %arg5: memref<1x128xf32, #tpu.memory_space<vmem>>, %arg6: memref<2x128x128xf32, #tpu.memory_space<vmem>>, %arg7: memref<128x256xf32, #tpu.memory_space<vmem>>) attributes {dimension_semantics = [#tpu.dimension_semantics<parallel>, #tpu.dimension_semantics<arbitrary>], iteration_bounds = array<i64: 1, 1>, scalar_prefetch = 0 : i64, scratch_operands = 1 : i64, tpu.core_type = #tpu.core_type<tc>, window_params = [{pipeline_mode = #tpu.pipeline_mode<synchronous>, transform_indices = @transform_0, window_bounds = array<i64: 128, 256>}, {transform_indices = @transform_1, window_bounds = array<i64: 128, 128>}, {pipeline_mode = #tpu.pipeline_mode<synchronous>, transform_indices = @transform_2, window_bounds = array<i64: 128, 128>}, {pipeline_mode = #tpu.pipeline_mode<synchronous>, transform_indices = @transform_3, window_bounds = array<i64: 1, 128>}, {transform_indices = @transform_4, window_bounds = array<i64: 2, 128, 128>}]} {
    %c128_i32 = arith.constant 128 : i32
    %0 = arith.muli %arg1, %c128_i32 : i32
    %1 = tpu.assume_multiple %0, 128 : i32
    %2 = arith.index_cast %1 : i32 to index
    %c0 = arith.constant 0 : index
    %3 = vector.load %arg2[%2, %c0] : memref<128x256xbf16, #tpu.memory_space<vmem>>, vector<128x256xbf16>
    %c0_0 = arith.constant 0 : index
    %c0_1 = arith.constant 0 : index
    %4 = vector.load %arg3[%c0_0, %c0_1] : memref<128x128xbf16, #tpu.memory_space<vmem>>, vector<128x128xbf16>
    %cst = arith.constant dense<0.000000e+00> : vector<128x256xf32>
    %5 = tpu.matmul %4, %3, %cst {dimension_numbers = #tpu.dot_dimension_numbers<[1], [0], [0], [1], [0, 0, 1, 1], [], []>} : vector<128x128xbf16>, vector<128x256xbf16>, vector<128x256xf32> -> vector<128x256xf32>
    %c0_i32 = arith.constant 0 : i32
    %6 = arith.cmpi eq, %arg1, %c0_i32 : i32
    %7 = arith.extui %6 : i1 to i32
    %c0_i32_2 = arith.constant 0 : i32
    %8 = arith.cmpi ne, %7, %c0_i32_2 : i32
    scf.if %8 {
      %c0_7 = arith.constant 0 : index
      %c0_8 = arith.constant 0 : index
      %15 = vector.load %arg7[%c0_7, %c0_8] : memref<128x256xf32, #tpu.memory_space<vmem>>, vector<128x256xf32>
      tpu.vector_store %arg7[%c0_7, %c0_8], %5 {strides = array<i32>} : memref<128x256xf32, #tpu.memory_space<vmem>>, vector<128x256xf32>,
    } else {
    }
    %c0_i32_3 = arith.constant 0 : i32
    %9 = arith.cmpi sgt, %arg1, %c0_i32_3 : i32
    %10 = arith.extui %9 : i1 to i32
    %c0_i32_4 = arith.constant 0 : i32
    %11 = arith.cmpi ne, %10, %c0_i32_4 : i32
    scf.if %11 {
      %c0_7 = arith.constant 0 : index
      %c0_8 = arith.constant 0 : index
      %15 = vector.load %arg7[%c0_7, %c0_8] : memref<128x256xf32, #tpu.memory_space<vmem>>, vector<128x256xf32>
      %16 = arith.addf %15, %5 : vector<128x256xf32>
      %c0_9 = arith.constant 0 : index
      %c0_10 = arith.constant 0 : index
      %17 = vector.load %arg7[%c0_9, %c0_10] : memref<128x256xf32, #tpu.memory_space<vmem>>, vector<128x256xf32>
      tpu.vector_store %arg7[%c0_9, %c0_10], %16 {strides = array<i32>} : memref<128x256xf32, #tpu.memory_space<vmem>>, vector<128x256xf32>,
    } else {
    }
    %c0_i32_5 = arith.constant 0 : i32
    %12 = arith.cmpi eq, %arg1, %c0_i32_5 : i32
    %13 = arith.extui %12 : i1 to i32
    %c0_i32_6 = arith.constant 0 : i32
    %14 = arith.cmpi ne, %13, %c0_i32_6 : i32
    scf.if %14 {
      %c0_7 = arith.constant 0 : index
      %c0_8 = arith.constant 0 : index
      %15 = vector.load %arg7[%c0_7, %c0_8] : memref<128x256xf32, #tpu.memory_space<vmem>>, vector<128x128xf32>
      %16 = arith.truncf %15 : vector<128x128xf32> to vector<128x128xbf16>
      %c0_9 = arith.constant 0 : index
      %c0_10 = arith.constant 0 : index
      %17 = vector.load %arg4[%c0_9, %c0_10] : memref<128x128xbf16, #tpu.memory_space<vmem>>, vector<128x128xbf16>
      %cst_11 = arith.constant dense<0.000000e+00> : vector<128x128xf32>
      %18 = tpu.matmul %16, %17, %cst_11 {dimension_numbers = #tpu.dot_dimension_numbers<[1], [0], [0], [1], [0, 0, 1, 1], [], []>} : vector<128x128xbf16>, vector<128x128xbf16>, vector<128x128xf32> -> vector<128x128xf32>
      %c0_12 = arith.constant 0 : index
      %c0_13 = arith.constant 0 : index
      %19 = vector.load %arg5[%c0_12, %c0_13] : memref<1x128xf32, #tpu.memory_space<vmem>>, vector<1x128xf32>
      %20 = vector.broadcast %19 : vector<1x128xf32> to vector<128x128xf32>
      %21 = arith.addf %18, %20 : vector<128x128xf32>
      %c0_14 = arith.constant 0 : index
      %c0_15 = arith.constant 0 : index
      %c0_16 = arith.constant 0 : index
      %22 = vector.load %arg6[%c0_14, %c0_15, %c0_16] : memref<2x128x128xf32, #tpu.memory_space<vmem>>, vector<1x128x128xf32>
      %23 = vector.shape_cast %22 : vector<1x128x128xf32> to vector<128x128xf32>
      %24 = vector.shape_cast %21 : vector<128x128xf32> to vector<1x128x128xf32>
      tpu.vector_store %arg6[%c0_14, %c0_15, %c0_16], %24 {strides = array<i32>} : memref<2x128x128xf32, #tpu.memory_space<vmem>>, vector<1x128x128xf32>,
      %c0_17 = arith.constant 0 : index
      %c128 = arith.constant 128 : index
      %25 = vector.load %arg7[%c0_17, %c128] : memref<128x256xf32, #tpu.memory_space<vmem>>, vector<128x128xf32>
      %26 = arith.truncf %25 : vector<128x128xf32> to vector<128x128xbf16>
      %c0_18 = arith.constant 0 : index
      %c0_19 = arith.constant 0 : index
      %27 = vector.load %arg4[%c0_18, %c0_19] : memref<128x128xbf16, #tpu.memory_space<vmem>>, vector<128x128xbf16>
      %cst_20 = arith.constant dense<0.000000e+00> : vector<128x128xf32>
      %28 = tpu.matmul %26, %27, %cst_20 {dimension_numbers = #tpu.dot_dimension_numbers<[1], [0], [0], [1], [0, 0, 1, 1], [], []>} : vector<128x128xbf16>, vector<128x128xbf16>, vector<128x128xf32> -> vector<128x128xf32>
      %c0_21 = arith.constant 0 : index
      %c0_22 = arith.constant 0 : index
      %29 = vector.load %arg5[%c0_21, %c0_22] : memref<1x128xf32, #tpu.memory_space<vmem>>, vector<1x128xf32>
      %30 = vector.broadcast %29 : vector<1x128xf32> to vector<128x128xf32>
      %31 = arith.addf %28, %30 : vector<128x128xf32>
      %c1 = arith.constant 1 : index
      %c0_23 = arith.constant 0 : index
      %c0_24 = arith.constant 0 : index
      %32 = vector.load %arg6[%c1, %c0_23, %c0_24] : memref<2x128x128xf32, #tpu.memory_space<vmem>>, vector<1x128x128xf32>
      %33 = vector.shape_cast %32 : vector<1x128x128xf32> to vector<128x128xf32>
      %34 = vector.shape_cast %31 : vector<128x128xf32> to vector<1x128x128xf32>
      tpu.vector_store %arg6[%c1, %c0_23, %c0_24], %34 {strides = array<i32>} : memref<2x128x128xf32, #tpu.memory_space<vmem>>, vector<1x128x128xf32>,
    } else {
    }
    return
  }
  func.func @transform_0(%arg0: i32, %arg1: i32) -> (i32, i32) {
    %c0_i32 = arith.constant 0 : i32
    %c0_i32_0 = arith.constant 0 : i32
    %c0_i32_1 = arith.constant 0 : i32
    return %c0_i32, %c0_i32_0 : i32, i32
  }
  func.func @transform_1(%arg0: i32, %arg1: i32) -> (i32, i32) {
    %c0_i32 = arith.constant 0 : i32
    return %arg0, %arg1 : i32, i32
  }
  func.func @transform_2(%arg0: i32, %arg1: i32) -> (i32, i32) {
    %c0_i32 = arith.constant 0 : i32
    %c0_i32_0 = arith.constant 0 : i32
    %c0_i32_1 = arith.constant 0 : i32
    return %c0_i32, %c0_i32_0 : i32, i32
  }
  func.func @transform_3(%arg0: i32, %arg1: i32) -> (i32, i32) {
    %c0_i32 = arith.constant 0 : i32
    %c0_i32_0 = arith.constant 0 : i32
    %c0_i32_1 = arith.constant 0 : i32
    return %c0_i32, %c0_i32_0 : i32, i32
  }
  func.func @transform_4(%arg0: i32, %arg1: i32) -> (i32, i32, i32) {
    %c0_i32 = arith.constant 0 : i32
    %c0_i32_0 = arith.constant 0 : i32
    %c0_i32_1 = arith.constant 0 : i32
    return %c0_i32, %arg0, %c0_i32_0 : i32, i32, i32
  }
}

module attributes {stable_mosaic.version = 11 : i64} {
  func.func @kernel(%arg0: i32, %arg1: i32, %arg2: memref<128x256xbf16, #tpu.memory_space<vmem>>, %arg3: memref<128x128xbf16, #tpu.memory_space<vmem>>, %arg4: memref<128x128xbf16, #tpu.memory_space<vmem>>, %arg5: memref<1x128xf32, #tpu.memory_space<vmem>>, %arg6: memref<2x128x128xf32, #tpu.memory_space<vmem>>, %arg7: memref<128x256xf32, #tpu.memory_space<vmem>>) attributes {dimension_semantics = [#tpu.dimension_semantics<parallel>, #tpu.dimension_semantics<arbitrary>], iteration_bounds = array<i64: 1, 1>, scalar_prefetch = 0 : i64, scratch_operands = 1 : i64, tpu.core_type = #tpu.core_type<tc>, window_params = [{pipeline_mode = #tpu.pipeline_mode<synchronous>, transform_indices = @transform_0, window_bounds = array<i64: 128, 256>}, {transform_indices = @transform_1, window_bounds = array<i64: 128, 128>}, {pipeline_mode = #tpu.pipeline_mode<synchronous>, transform_indices = @transform_2, window_bounds = array<i64: 128, 128>}, {pipeline_mode = #tpu.pipeline_mode<synchronous>, transform_indices = @transform_3, window_bounds = array<i64: 1, 128>}, {transform_indices = @transform_4, window_bounds = array<i64: 2, 128, 128>}]} {
    %c128_i32 = arith.constant 128 : i32
    %0 = arith.muli %arg1, %c128_i32 : i32
    %1 = tpu.assume_multiple %0, 128 : i32
    %2 = arith.index_cast %1 : i32 to index
    %c0 = arith.constant 0 : index
    %3 = vector.load %arg2[%2, %c0] : memref<128x256xbf16, #tpu.memory_space<vmem>>, vector<128x256xbf16>
    %c0_0 = arith.constant 0 : index
    %c0_1 = arith.constant 0 : index
    %4 = vector.load %arg3[%c0_0, %c0_1] : memref<128x128xbf16, #tpu.memory_space<vmem>>, vector<128x128xbf16>
    %cst = arith.constant dense<0.000000e+00> : vector<128x256xf32>
    %5 = tpu.matmul %4, %3, %cst {dimension_numbers = #tpu.dot_dimension_numbers<[1], [0], [0], [1], [0, 0, 1, 1], [], []>} : vector<128x128xbf16>, vector<128x256xbf16>, vector<128x256xf32> -> vector<128x256xf32>
    %c0_i32 = arith.constant 0 : i32
    %6 = arith.cmpi eq, %arg1, %c0_i32 : i32
    %7 = arith.extui %6 : i1 to i32
    %c0_i32_2 = arith.constant 0 : i32
    %8 = arith.cmpi ne, %7, %c0_i32_2 : i32
    scf.if %8 {
      %c0_7 = arith.constant 0 : index
      %c0_8 = arith.constant 0 : index
      %15 = vector.load %arg7[%c0_7, %c0_8] : memref<128x256xf32, #tpu.memory_space<vmem>>, vector<128x256xf32>
      tpu.vector_store %arg7[%c0_7, %c0_8], %5 {strides = array<i32>} : memref<128x256xf32, #tpu.memory_space<vmem>>, vector<128x256xf32>,
    } else {
    }
    %c0_i32_3 = arith.constant 0 : i32
    %9 = arith.cmpi sgt, %arg1, %c0_i32_3 : i32
    %10 = arith.extui %9 : i1 to i32
    %c0_i32_4 = arith.constant 0 : i32
    %11 = arith.cmpi ne, %10, %c0_i32_4 : i32
    scf.if %11 {
      %c0_7 = arith.constant 0 : index
      %c0_8 = arith.constant 0 : index
      %15 = vector.load %arg7[%c0_7, %c0_8] : memref<128x256xf32, #tpu.memory_space<vmem>>, vector<128x256xf32>
      %16 = arith.addf %15, %5 : vector<128x256xf32>
      %c0_9 = arith.constant 0 : index
      %c0_10 = arith.constant 0 : index
      %17 = vector.load %arg7[%c0_9, %c0_10] : memref<128x256xf32, #tpu.memory_space<vmem>>, vector<128x256xf32>
      tpu.vector_store %arg7[%c0_9, %c0_10], %16 {strides = array<i32>} : memref<128x256xf32, #tpu.memory_space<vmem>>, vector<128x256xf32>,
    } else {
    }
    %c0_i32_5 = arith.constant 0 : i32
    %12 = arith.cmpi eq, %arg1, %c0_i32_5 : i32
    %13 = arith.extui %12 : i1 to i32
    %c0_i32_6 = arith.constant 0 : i32
    %14 = arith.cmpi ne, %13, %c0_i32_6 : i32
    scf.if %14 {
      %c0_7 = arith.constant 0 : index
      %c0_8 = arith.constant 0 : index
      %15 = vector.load %arg7[%c0_7, %c0_8] : memref<128x256xf32, #tpu.memory_space<vmem>>, vector<128x128xf32>
      %16 = arith.truncf %15 : vector<128x128xf32> to vector<128x128xbf16>
      %c0_9 = arith.constant 0 : index
      %c0_10 = arith.constant 0 : index
      %17 = vector.load %arg4[%c0_9, %c0_10] : memref<128x128xbf16, #tpu.memory_space<vmem>>, vector<128x128xbf16>
      %cst_11 = arith.constant dense<0.000000e+00> : vector<128x128xf32>
      %18 = tpu.matmul %16, %17, %cst_11 {dimension_numbers = #tpu.dot_dimension_numbers<[1], [0], [0], [1], [0, 0, 1, 1], [], []>} : vector<128x128xbf16>, vector<128x128xbf16>, vector<128x128xf32> -> vector<128x128xf32>
      %c0_12 = arith.constant 0 : index
      %c0_13 = arith.constant 0 : index
      %19 = vector.load %arg5[%c0_12, %c0_13] : memref<1x128xf32, #tpu.memory_space<vmem>>, vector<1x128xf32>
      %20 = vector.broadcast %19 : vector<1x128xf32> to vector<128x128xf32>
      %21 = arith.addf %18, %20 : vector<128x128xf32>
      %c0_14 = arith.constant 0 : index
      %c0_15 = arith.constant 0 : index
      %c0_16 = arith.constant 0 : index
      %22 = vector.load %arg6[%c0_14, %c0_15, %c0_16] : memref<2x128x128xf32, #tpu.memory_space<vmem>>, vector<1x128x128xf32>
      %23 = vector.shape_cast %22 : vector<1x128x128xf32> to vector<128x128xf32>
      %24 = vector.shape_cast %21 : vector<128x128xf32> to vector<1x128x128xf32>
      tpu.vector_store %arg6[%c0_14, %c0_15, %c0_16], %24 {strides = array<i32>} : memref<2x128x128xf32, #tpu.memory_space<vmem>>, vector<1x128x128xf32>,
      %c0_17 = arith.constant 0 : index
      %c128 = arith.constant 128 : index
      %25 = vector.load %arg7[%c0_17, %c128] : memref<128x256xf32, #tpu.memory_space<vmem>>, vector<128x128xf32>
      %26 = arith.truncf %25 : vector<128x128xf32> to vector<128x128xbf16>
      %c0_18 = arith.constant 0 : index
      %c0_19 = arith.constant 0 : index
      %27 = vector.load %arg4[%c0_18, %c0_19] : memref<128x128xbf16, #tpu.memory_space<vmem>>, vector<128x128xbf16>
      %cst_20 = arith.constant dense<0.000000e+00> : vector<128x128xf32>
      %28 = tpu.matmul %26, %27, %cst_20 {dimension_numbers = #tpu.dot_dimension_numbers<[1], [0], [0], [1], [0, 0, 1, 1], [], []>} : vector<128x128xbf16>, vector<128x128xbf16>, vector<128x128xf32> -> vector<128x128xf32>
      %c0_21 = arith.constant 0 : index
      %c0_22 = arith.constant 0 : index
      %29 = vector.load %arg5[%c0_21, %c0_22] : memref<1x128xf32, #tpu.memory_space<vmem>>, vector<1x128xf32>
      %30 = vector.broadcast %29 : vector<1x128xf32> to vector<128x128xf32>
      %31 = arith.addf %28, %30 : vector<128x128xf32>
      %c1 = arith.constant 1 : index
      %c0_23 = arith.constant 0 : index
      %c0_24 = arith.constant 0 : index
      %32 = vector.load %arg6[%c1, %c0_23, %c0_24] : memref<2x128x128xf32, #tpu.memory_space<vmem>>, vector<1x128x128xf32>
      %33 = vector.shape_cast %32 : vector<1x128x128xf32> to vector<128x128xf32>
      %34 = vector.shape_cast %31 : vector<128x128xf32> to vector<1x128x128xf32>
      tpu.vector_store %arg6[%c1, %c0_23, %c0_24], %34 {strides = array<i32>} : memref<2x128x128xf32, #tpu.memory_space<vmem>>, vector<1x128x128xf32>,
    } else {
    }
    return
  }
  func.func @transform_0(%arg0: i32, %arg1: i32) -> (i32, i32) {
    %c0_i32 = arith.constant 0 : i32
    %c0_i32_0 = arith.constant 0 : i32
    %c0_i32_1 = arith.constant 0 : i32
    return %c0_i32, %c0_i32_0 : i32, i32
  }
  func.func @transform_1(%arg0: i32, %arg1: i32) -> (i32, i32) {
    %c0_i32 = arith.constant 0 : i32
    return %arg0, %arg1 : i32, i32
  }
  func.func @transform_2(%arg0: i32, %arg1: i32) -> (i32, i32) {
    %c0_i32 = arith.constant 0 : i32
    %c0_i32_0 = arith.constant 0 : i32
    %c0_i32_1 = arith.constant 0 : i32
    return %c0_i32, %c0_i32_0 : i32, i32
  }
  func.func @transform_3(%arg0: i32, %arg1: i32) -> (i32, i32) {
    %c0_i32 = arith.constant 0 : i32
    %c0_i32_0 = arith.constant 0 : i32
    %c0_i32_1 = arith.constant 0 : i32
    return %c0_i32, %c0_i32_0 : i32, i32
  }
  func.func @transform_4(%arg0: i32, %arg1: i32) -> (i32, i32, i32) {
    %c0_i32 = arith.constant 0 : i32
    %c0_i32_0 = arith.constant 0 : i32
    %c0_i32_1 = arith.constant 0 : i32
    return %c0_i32, %arg0, %c0_i32_0 : i32, i32, i32
  }
}

</mosaic_0001>

<bundles_post_ra>
// kernel: tpu_custom_call.1
= control target key start
LH: loop header
LB: loop body
LE: loop exit
PB: predicated region body
PF: predicated region fallthrough
CT: control target
= control target key end

     0   :  { %9 = vsyncpa [#allocation4], 0  ;;  %s1302_s0 = inlined_call_operand.hbm [shape: bf16[128,256], index: 0, kind: input, shape index: {}]   ;;  %s1303_s1 = inlined_call_operand.hbm [shape: bf16[128,128], index: 1, kind: input, shape index: {}]   ;;  %s1304_s2 = inlined_call_operand.hbm [shape: bf16[128,128], index: 2, kind: input, shape index: {}]   ;;  %s1305_s3 = inlined_call_operand.vmem [shape: f32[1,128], index: 3, kind: input, shape index: {}]   ;;  %s1306_s4 = inlined_call_operand.hbm [shape: f32[2,128,128], index: 4, kind: output, shape index: {}]  }
   0x1   :  { %10 = vsyncpa [#allocation7], 0 }
   0x2   :  { %11 = vsyncpa [#allocation5], 0  ;;  %s1196_s15 = smov [#allocation6]  }
   0x3   :  { %s29_s16 = sshll.u32 %s1196_s15, 4  ;;  %s30_s16 = int_to_ptr.vmem [resolvable:$true] %s29_s16 }
   0x4   :  { %s1118_s17 = scalar_lea.vmem %s30_s16, 1024  ;;  %p1123_p1 = scmp.lt.s32.totalorder %s30_s16, %s30_s16 }
   0x5   :  { %p1119_p0 = scmp.ne.s32.totalorder %s30_s16, %s1118_s17  ;;  %p1124_p2 = scmp.lt.s32.totalorder %s1118_s17, %s1118_s17 }
   0x7   :  { %p1125_p3 = por %p1124_p2, %p1123_p1 }
   0x9   :  { %p1126_p4 = pnand %p1125_p3, %p1119_p0 }
   0xb   :  { %1129 = shalt.err (!%p1126_p4)
}
   0xc   :  { %s1197_s18 = smov 64   ;;  %s1198_s19 = smov 4  }
   0xd   :  { %35 = dma.hbm_to_vmem [thread:$0]  %s1303_s1, 1024, %s30_s16, [#allocation7], %s1197_s18, %s1197_s18, %s1198_s19  }
   0xe   :  { %s1199_s22 = smov [#allocation3]  }
   0xf   :  { %s17_s23 = sshll.u32 %s1199_s22, 4  ;;  %s18_s23 = int_to_ptr.vmem [resolvable:$true] %s17_s23 }
  0x10   :  { %s1138_s24 = scalar_lea.vmem %s18_s23, 2048  ;;  %p1143_p6 = scmp.lt.s32.totalorder %s18_s23, %s18_s23 }
  0x11   :  { %p1139_p5 = scmp.ne.s32.totalorder %s18_s23, %s1138_s24  ;;  %p1144_p7 = scmp.lt.s32.totalorder %s1138_s24, %s1138_s24 }
  0x13   :  { %p1145_p8 = por %p1144_p7, %p1143_p6 }
  0x15   :  { %p1146_p9 = pnand %p1145_p8, %p1139_p5 }
  0x17   :  { %1149 = shalt.err (!%p1146_p9)
}
  0x18   :  { %s1200_s25 = smov 128   ;;  %s1201_s26 = smov 8  }
  0x19   :  { %23 = dma.hbm_to_vmem [thread:$0]  %s1302_s0, 2048, %s18_s23, [#allocation4], %s1200_s25, %s1200_s25, %s1201_s26  }
  0x1a   :  { %s1202_s1 = smov [#allocation8]  }
  0x1b   :  { %s41_s29 = sshll.u32 %s1202_s1, 4  ;;  %s42_s29 = int_to_ptr.vmem [resolvable:$true] %s41_s29 }
  0x1c   :  { %s1158_s30 = scalar_lea.vmem %s42_s29, 1024  ;;  %p1163_p11 = scmp.lt.s32.totalorder %s42_s29, %s42_s29 }
  0x1d   :  { %p1159_p10 = scmp.ne.s32.totalorder %s42_s29, %s1158_s30  ;;  %p1164_p12 = scmp.lt.s32.totalorder %s1158_s30, %s1158_s30 }
  0x1f   :  { %p1165_p13 = por %p1164_p12, %p1163_p11 }
  0x21   :  { %p1166_p0 = pnand %p1165_p13, %p1159_p10 }
  0x23   :  { %1169 = shalt.err (!%p1166_p0)
}
  0x24   :  { %47 = dma.hbm_to_vmem [thread:$0]  %s1304_s2, 1024, %s42_s29, [#allocation7], %s1197_s18, %s1197_s18, %s1198_s19  }
  0x25   :  { %1190 = dma.done.wait [#allocation4], 2048  }
  0x26   :  { %1191 = vsyncadd [#allocation4], 4294965248 }
  0x27   :  { %1192 = dma.done.wait [#allocation7], 2048  }
  0x28   :  { %1193 = vsyncadd [#allocation7], 4294965248  ;;  %v1203_v0 = vmov 0   ;;  %v1062_v1 = vld [vmem:[#allocation3 + $0x74] ss:$8 sps:$4 sm:$0xff]   ;;  %v1096_v18 = vld [vmem:[#allocation8 + $0x28] sm:$0xff]  }
  0x29   :  { %258 = vmatprep.mubr.bf16.mxu0 %v1203_v0  ;;  %v1064_v2 = vld [vmem:[#allocation3 + $0x70] ss:$8 sps:$4 sm:$0xff]   ;;  %226 = vmatprep.subr.bf16.mxu0 %v1062_v1  ;;  %v1065_v3 = vld [vmem:[#allocation3 + $0x64] ss:$8 sps:$4 sm:$0xff]   ;;  %v1067_v4 = vld [vmem:[#allocation3 + $0x60] ss:$8 sps:$4 sm:$0xff]  }
  0x2a   :  { %227 = vmatpush1.bf16.msra.mxu0 %v1064_v2  ;;  %v1068_v5 = vld [vmem:[#allocation3 + $0x54] ss:$8 sps:$4 sm:$0xff]   ;;  %v1070_v6 = vld [vmem:[#allocation3 + $0x50] ss:$8 sps:$4 sm:$0xff]   ;;  %v1071_v7 = vld [vmem:[#allocation3 + $0x44] ss:$8 sps:$4 sm:$0xff]  }
  0x2b   :  { %228 = vmatprep.subr.bf16.mxu0 %v1065_v3  ;;  %v1073_v8 = vld [vmem:[#allocation3 + $0x40] ss:$8 sps:$4 sm:$0xff]   ;;  %v1074_v9 = vld [vmem:[#allocation3 + $0x34] ss:$8 sps:$4 sm:$0xff]   ;;  %v1076_v10 = vld [vmem:[#allocation3 + $0x30] ss:$8 sps:$4 sm:$0xff]  }
  0x2c   :  { %v1077_v11 = vld [vmem:[#allocation3 + $0x24] ss:$8 sps:$4 sm:$0xff]   ;;  %v1079_v12 = vld [vmem:[#allocation3 + $0x20] ss:$8 sps:$4 sm:$0xff]   ;;  %v1080_v13 = vld [vmem:[#allocation3 + $0x14] ss:$8 sps:$4 sm:$0xff]  }
  0x2d   :  { %v1094_v14 = vld [vmem:[#allocation8 + $0x38] sm:$0xff]   ;;  %v1095_v15 = vld [vmem:[#allocation8 + $0x30] sm:$0xff]   ;;  %v1083_v17 = vld [vmem:[#allocation3 + $0x4] ss:$8 sps:$4 sm:$0xff]  }
  0x2e   :  { %229 = vmatpush1.bf16.msra.mxu0 %v1067_v4  ;;  %v1082_v16 = vld [vmem:[#allocation3 + $0x10] ss:$8 sps:$4 sm:$0xff]   ;;  %989 = vmatprep.subr.bf16.mxu1 %v1094_v14  ;;  %v1085_v19 = vld [vmem:[#allocation3] ss:$8 sps:$4 sm:$0xff]  }
  0x2f   :  { %230 = vmatprep.subr.bf16.mxu0 %v1068_v5  ;;  %990 = vmatpush3.bf16.msra.mxu1 %v1094_v14  ;;  %v1097_v20 = vld [vmem:[#allocation8 + $0x20] sm:$0xff]   ;;  %v1098_v22 = vld [vmem:[#allocation8 + $0x18] sm:$0xff]   ;;  %v1087_v23 = vld [vmem:[#allocation6 + $0x8] sm:$0xff]  }
  0x30   :  { %991 = vmatprep.subr.bf16.mxu1 %v1095_v15  ;;  %v1086_v21 = vld [vmem:[#allocation6] sm:$0xff]   ;;  %v1088_v24 = vld [vmem:[#allocation6 + $0x10] sm:$0xff]   ;;  %v1089_v25 = vld [vmem:[#allocation6 + $0x18] sm:$0xff]  }
  0x31   :  { %v1090_v26 = vld [vmem:[#allocation6 + $0x20] sm:$0xff]   ;;  %v1091_v27 = vld [vmem:[#allocation6 + $0x28] sm:$0xff]   ;;  %v1092_v28 = vld [vmem:[#allocation6 + $0x30] sm:$0xff]  }
  0x32   :  { %231 = vmatpush1.bf16.msra.mxu0 %v1070_v6  ;;  %v1093_v29 = vld [vmem:[#allocation6 + $0x38] sm:$0xff]   ;;  %v1099_v30 = vld [vmem:[#allocation8 + $0x10] sm:$0xff]   ;;  %v1100_v31 = vld [vmem:[#allocation8 + $0x8] sm:$0xff]  }
  0x33   :  { %232 = vmatprep.subr.bf16.mxu0 %v1071_v7  ;;  %992 = vmatpush3.bf16.msra.mxu1 %v1095_v15  ;;  %v1101_v32 = vld [vmem:[#allocation8] sm:$0xff]   ;;  %v1102_v33 = vld [vmem:[#allocation8 + $0x38] sm:$0xff]   ;;  %v1103_v43 = vld [vmem:[#allocation8 + $0x30] sm:$0xff]  }
  0x34   :  { %993 = vmatprep.subr.bf16.mxu1 %v1096_v18  ;;  %v1104_v46 = vld [vmem:[#allocation8 + $0x28] sm:$0xff]   ;;  %v1105_v50 = vld [vmem:[#allocation8 + $0x20] sm:$0xff]   ;;  %v1106_v53 = vld [vmem:[#allocation8 + $0x18] sm:$0xff]  }
  0x35   :  { %v1107_v57 = vld [vmem:[#allocation8 + $0x10] sm:$0xff]   ;;  %v1108_v60 = vld [vmem:[#allocation8 + $0x8] sm:$0xff]  }
  0x36   :  { %233 = vmatpush1.bf16.msra.mxu0 %v1073_v8 }
  0x37   :  { %234 = vmatprep.subr.bf16.mxu0 %v1074_v9  ;;  %994 = vmatpush3.bf16.msra.mxu1 %v1096_v18 }
  0x38   :  { %995 = vmatprep.subr.bf16.mxu1 %v1097_v20 }
  0x3a   :  { %235 = vmatpush1.bf16.msra.mxu0 %v1076_v10 }
  0x3b   :  { %236 = vmatprep.subr.bf16.mxu0 %v1077_v11  ;;  %996 = vmatpush3.bf16.msra.mxu1 %v1097_v20 }
  0x3c   :  { %997 = vmatprep.subr.bf16.mxu1 %v1098_v22 }
  0x3e   :  { %237 = vmatpush1.bf16.msra.mxu0 %v1079_v12 }
  0x3f   :  { %238 = vmatprep.subr.bf16.mxu0 %v1080_v13  ;;  %998 = vmatpush3.bf16.msra.mxu1 %v1098_v22 }
  0x40   :  { %999 = vmatprep.subr.bf16.mxu1 %v1099_v30 }
  0x42   :  { %239 = vmatpush1.bf16.msra.mxu0 %v1082_v16 }
  0x43   :  { %240 = vmatprep.subr.bf16.mxu0 %v1083_v17  ;;  %1000 = vmatpush3.bf16.msra.mxu1 %v1099_v30 }
  0x44   :  { %1001 = vmatprep.subr.bf16.mxu1 %v1100_v31 }
  0x46   :  { %241 = vmatpush1.bf16.msra.mxu0 %v1085_v19 }
  0x47   :  { %1002 = vmatpush3.bf16.msra.mxu1 %v1100_v31 }
  0x48   :  { %1003 = vmatprep.subr.bf16.mxu1 %v1101_v32 }
  0x49   :  { %259 = vmatmul.mubr.bf16.vlgmr.msra.gmra.mxu0 %v1086_v21 }
  0x4a   :  { %268 = vmatprep.mubr.bf16.mxu0 %v1203_v0 }
  0x4b   :  { %1004 = vmatpush3.bf16.msra.mxu1 %v1101_v32 }
  0x4c   :  { %1021 = vmatprep.subr.bf16.mxu1 %v1102_v33 }
  0x51   :  { %269 = vmatmul.mubr.bf16.gmra.mxu0 %v1087_v23 }
  0x52   :  { %278 = vmatprep.mubr.bf16.mxu0 %v1203_v0 }
  0x59   :  { %279 = vmatmul.mubr.bf16.gmra.mxu0 %v1088_v24 }
  0x5a   :  { %288 = vmatprep.mubr.bf16.mxu0 %v1203_v0 }
  0x61   :  { %289 = vmatmul.mubr.bf16.gmra.mxu0 %v1089_v25  ;;  %v1262_v25 = vld [vmem:[%s1305_s3] ss:$0 sm:$0xff]  ;;  %s1204_s3 = smov [#allocation9]  }
  0x62   :  { %298 = vmatprep.mubr.bf16.mxu0 %v1203_v0  ;;  %s900_s7 = sshll.u32 %s1204_s3, 4  ;;  %s901_s7 = int_to_ptr.vmem [resolvable:$true] %s900_s7 }
  0x63   :  { %s1170_s8 = scalar_lea.vmem %s901_s7, 4096  ;;  %p1175_p2 = scmp.lt.s32.totalorder %s901_s7, %s901_s7 }
  0x64   :  { %p1171_p1 = scmp.ne.s32.totalorder %s901_s7, %s1170_s8  ;;  %p1176_p3 = scmp.lt.s32.totalorder %s1170_s8, %s1170_s8 }
  0x66   :  { %p1177_p4 = por %p1176_p3, %p1175_p2 }
  0x68   :  { %p1178_p5 = pnand %p1177_p4, %p1171_p1 }
  0x69   :  { %299 = vmatmul.mubr.bf16.gmra.mxu0 %v1090_v26 }
  0x6a   :  { %308 = vmatprep.mubr.bf16.mxu0 %v1203_v0 }
  0x71   :  { %309 = vmatmul.mubr.bf16.gmra.mxu0 %v1091_v27 }
  0x72   :  { %318 = vmatprep.mubr.bf16.mxu0 %v1203_v0 }
  0x79   :  { %319 = vmatmul.mubr.bf16.gmra.mxu0 %v1092_v28 }
  0x7a   :  { %328 = vmatprep.mubr.bf16.mxu0 %v1203_v0  ;;  %v1109_v0 = vld [vmem:[#allocation8] sm:$0xff]  }
  0x81   :  { %329 = vmatmul.mubr.bf16.gmra.mxu0 %v1093_v29 }
 0x109   :  { %v260_v34 = vpop.f32.mrf.mxu0 }
 0x10b   :  { %v1250_v35 = vpop.f32.mrf.mxu0 }
 0x10d   :  { %v264_v36 = vpop.f32.mrf.mxu0 }
 0x10e   :  { %v494_v37 = vpack.c.bf16 %v264_v36, %v260_v34 }
 0x10f   :  { %v1252_v38 = vpop.f32.mrf.mxu0 }
 0x110   :  { %1005 = vmatprep.mubr.bf16.mxu1 %v494_v37  ;;  %v702_v16 = vpack.c.bf16 %v1252_v38, %v1250_v35 }
 0x111   :  { %v270_v39 = vpop.f32.mrf.mxu0 }
 0x113   :  { %v1254_v40 = vpop.f32.mrf.mxu0 }
 0x115   :  { %v274_v41 = vpop.f32.mrf.mxu0 }
 0x116   :  { %v495_v42 = vpack.c.bf16 %v274_v41, %v270_v39 }
 0x117   :  { %v276_v44 = vpop.f32.mrf.mxu0 }
 0x118   :  { %1006 = vmatmul.mubr.bf16.vlgmr.msra.gmra.mxu1 %v495_v42  ;;  %v703_v17 = vpack.c.bf16 %v276_v44, %v1254_v40 }
 0x119   :  { %v280_v45 = vpop.f32.mrf.mxu0  ;;  %1022 = vmatpush3.bf16.msra.mxu1 %v1102_v33 }
 0x11a   :  { %1023 = vmatprep.subr.bf16.mxu1 %v1103_v43 }
 0x11b   :  { %v282_v47 = vpop.f32.mrf.mxu0 }
 0x11d   :  { %v284_v48 = vpop.f32.mrf.mxu0  ;;  %1024 = vmatpush3.bf16.msra.mxu1 %v1103_v43 }
 0x11e   :  { %v496_v49 = vpack.c.bf16 %v284_v48, %v280_v45  ;;  %1025 = vmatprep.subr.bf16.mxu1 %v1104_v46 }
 0x11f   :  { %v286_v51 = vpop.f32.mrf.mxu0 }
 0x120   :  { %1009 = vmatprep.mubr.bf16.mxu1 %v496_v49  ;;  %v704_v18 = vpack.c.bf16 %v286_v51, %v282_v47 }
 0x121   :  { %v290_v52 = vpop.f32.mrf.mxu0  ;;  %1026 = vmatpush3.bf16.msra.mxu1 %v1104_v46 }
 0x122   :  { %1027 = vmatprep.subr.bf16.mxu1 %v1105_v50 }
 0x123   :  { %v292_v54 = vpop.f32.mrf.mxu0 }
 0x125   :  { %v294_v55 = vpop.f32.mrf.mxu0  ;;  %1028 = vmatpush3.bf16.msra.mxu1 %v1105_v50 }
 0x126   :  { %v497_v56 = vpack.c.bf16 %v294_v55, %v290_v52  ;;  %1029 = vmatprep.subr.bf16.mxu1 %v1106_v53 }
 0x127   :  { %v296_v58 = vpop.f32.mrf.mxu0 }
 0x128   :  { %1010 = vmatmul.mubr.bf16.gmra.mxu1 %v497_v56  ;;  %v705_v19 = vpack.c.bf16 %v296_v58, %v292_v54 }
 0x129   :  { %v300_v59 = vpop.f32.mrf.mxu0  ;;  %1030 = vmatpush3.bf16.msra.mxu1 %v1106_v53 }
 0x12a   :  { %1031 = vmatprep.subr.bf16.mxu1 %v1107_v57 }
 0x12b   :  { %v302_v61 = vpop.f32.mrf.mxu0 }
 0x12d   :  { %v304_v62 = vpop.f32.mrf.mxu0  ;;  %1032 = vmatpush3.bf16.msra.mxu1 %v1107_v57 }
 0x12e   :  { %v498_v63 = vpack.c.bf16 %v304_v62, %v300_v59  ;;  %1033 = vmatprep.subr.bf16.mxu1 %v1108_v60 }
 0x12f   :  { %v306_v1 = vpop.f32.mrf.mxu0 }
 0x130   :  { %1013 = vmatprep.mubr.bf16.mxu1 %v498_v63  ;;  %v706_v20 = vpack.c.bf16 %v306_v1, %v302_v61 }
 0x131   :  { %v310_v2 = vpop.f32.mrf.mxu0  ;;  %1034 = vmatpush3.bf16.msra.mxu1 %v1108_v60 }
 0x132   :  { %1035 = vmatprep.subr.bf16.mxu1 %v1109_v0 }
 0x133   :  { %v312_v3 = vpop.f32.mrf.mxu0 }
 0x135   :  { %v314_v4 = vpop.f32.mrf.mxu0  ;;  %1036 = vmatpush3.bf16.msra.mxu1 %v1109_v0 }
 0x136   :  { %v499_v5 = vpack.c.bf16 %v314_v4, %v310_v2 }
 0x137   :  { %v316_v6 = vpop.f32.mrf.mxu0 }
 0x138   :  { %1014 = vmatmul.mubr.bf16.gmra.mxu1 %v499_v5  ;;  %v707_v21 = vpack.c.bf16 %v316_v6, %v312_v3 }
 0x139   :  { %v320_v7 = vpop.f32.mrf.mxu0 }
 0x13b   :  { %v322_v8 = vpop.f32.mrf.mxu0 }
 0x13d   :  { %v324_v9 = vpop.f32.mrf.mxu0 }
 0x13e   :  { %v500_v10 = vpack.c.bf16 %v324_v9, %v320_v7 }
 0x13f   :  { %v326_v11 = vpop.f32.mrf.mxu0 }
 0x140   :  { %1017 = vmatprep.mubr.bf16.mxu1 %v500_v10  ;;  %v708_v22 = vpack.c.bf16 %v326_v11, %v322_v8 }
 0x141   :  { %v330_v12 = vpop.f32.mrf.mxu0 }
 0x143   :  { %v332_v13 = vpop.f32.mrf.mxu0 }
 0x145   :  { %v334_v14 = vpop.f32.mrf.mxu0 }
 0x146   :  { %v501_v15 = vpack.c.bf16 %v334_v14, %v330_v12 }
 0x147   :  { %v336_v23 = vpop.f32.mrf.mxu0 }
 0x148   :  { %1018 = vmatmul.mubr.bf16.gmra.mxu1 %v501_v15  ;;  %v709_v24 = vpack.c.bf16 %v336_v23, %v332_v13 }
 0x149   :  { %1037 = vmatprep.mubr.bf16.mxu1 %v702_v16 }
 0x150   :  { %1038 = vmatmul.mubr.bf16.vlgmr.msra.gmra.mxu1 %v703_v17 }
 0x151   :  { %1041 = vmatprep.mubr.bf16.mxu1 %v704_v18 }
 0x158   :  { %1042 = vmatmul.mubr.bf16.gmra.mxu1 %v705_v19 }
 0x159   :  { %1045 = vmatprep.mubr.bf16.mxu1 %v706_v20 }
 0x160   :  { %1046 = vmatmul.mubr.bf16.gmra.mxu1 %v707_v21 }
 0x161   :  { %1049 = vmatprep.mubr.bf16.mxu1 %v708_v22 }
 0x168   :  { %1050 = vmatmul.mubr.bf16.gmra.mxu1 %v709_v24 }
 0x1d8   :  { %v1007_v26 = vpop.f32.mrf.mxu1 }
 0x1d9   :  { %v616_v27 = vadd.f32 %v1007_v26, %v1262_v25 }
 0x1da   :  { %v607_v28 = vpop.f32.mrf.mxu1 }
 0x1db   :  { %672 = vst [vmem:[#allocation9 + $0x10] sm:$0xff] %v616_v27  ;;  %v608_v29 = vadd.f32 %v1262_v25, %v607_v28 }
 0x1dc   :  { %v1008_v30 = vpop.f32.mrf.mxu1 }
 0x1dd   :  { %670 = vst [vmem:[#allocation9] sm:$0xff] %v608_v29  ;;  %v619_v31 = vadd.f32 %v1008_v30, %v1262_v25 }
 0x1de   :  { %v610_v32 = vpop.f32.mrf.mxu1 }
 0x1df   :  { %673 = vst [vmem:[#allocation9 + $0x18] sm:$0xff] %v619_v31  ;;  %v611_v33 = vadd.f32 %v1262_v25, %v610_v32 }
 0x1e1   :  { %671 = vst [vmem:[#allocation9 + $0x8] sm:$0xff] %v611_v33 }
 0x1e8   :  { %v1011_v34 = vpop.f32.mrf.mxu1 }
 0x1e9   :  { %v632_v35 = vadd.f32 %v1011_v34, %v1262_v25 }
 0x1ea   :  { %v623_v36 = vpop.f32.mrf.mxu1 }
 0x1eb   :  { %676 = vst [vmem:[#allocation9 + $0x30] sm:$0xff] %v632_v35  ;;  %v624_v37 = vadd.f32 %v1262_v25, %v623_v36 }
 0x1ec   :  { %v1012_v38 = vpop.f32.mrf.mxu1 }
 0x1ed   :  { %674 = vst [vmem:[#allocation9 + $0x20] sm:$0xff] %v624_v37  ;;  %v635_v39 = vadd.f32 %v1012_v38, %v1262_v25 }
 0x1ee   :  { %v626_v40 = vpop.f32.mrf.mxu1 }
 0x1ef   :  { %677 = vst [vmem:[#allocation9 + $0x38] sm:$0xff] %v635_v39  ;;  %v627_v41 = vadd.f32 %v1262_v25, %v626_v40 }
 0x1f1   :  { %675 = vst [vmem:[#allocation9 + $0x28] sm:$0xff] %v627_v41 }
 0x1f8   :  { %v1015_v42 = vpop.f32.mrf.mxu1 }
 0x1f9   :  { %v648_v43 = vadd.f32 %v1015_v42, %v1262_v25 }
 0x1fa   :  { %v639_v44 = vpop.f32.mrf.mxu1 }
 0x1fb   :  { %680 = vst [vmem:[#allocation9 + $0x50] sm:$0xff] %v648_v43  ;;  %v640_v45 = vadd.f32 %v1262_v25, %v639_v44 }
 0x1fc   :  { %v1016_v46 = vpop.f32.mrf.mxu1 }
 0x1fd   :  { %678 = vst [vmem:[#allocation9 + $0x40] sm:$0xff] %v640_v45  ;;  %v651_v47 = vadd.f32 %v1016_v46, %v1262_v25 }
 0x1fe   :  { %v642_v48 = vpop.f32.mrf.mxu1 }
 0x1ff   :  { %681 = vst [vmem:[#allocation9 + $0x58] sm:$0xff] %v651_v47  ;;  %v643_v49 = vadd.f32 %v1262_v25, %v642_v48 }
 0x201   :  { %679 = vst [vmem:[#allocation9 + $0x48] sm:$0xff] %v643_v49 }
 0x208   :  { %v1019_v50 = vpop.f32.mrf.mxu1 }
 0x209   :  { %v664_v51 = vadd.f32 %v1019_v50, %v1262_v25 }
 0x20a   :  { %v655_v52 = vpop.f32.mrf.mxu1 }
 0x20b   :  { %684 = vst [vmem:[#allocation9 + $0x70] sm:$0xff] %v664_v51  ;;  %v656_v53 = vadd.f32 %v1262_v25, %v655_v52 }
 0x20c   :  { %v1020_v54 = vpop.f32.mrf.mxu1 }
 0x20d   :  { %682 = vst [vmem:[#allocation9 + $0x60] sm:$0xff] %v656_v53  ;;  %v667_v55 = vadd.f32 %v1020_v54, %v1262_v25 }
 0x20e   :  { %v658_v56 = vpop.f32.mrf.mxu1 }
 0x20f   :  { %685 = vst [vmem:[#allocation9 + $0x78] sm:$0xff] %v667_v55  ;;  %v659_v57 = vadd.f32 %v1262_v25, %v658_v56 }
 0x210   :  { %v1039_v58 = vpop.f32.mrf.mxu1 }
 0x211   :  { %683 = vst [vmem:[#allocation9 + $0x68] sm:$0xff] %v659_v57  ;;  %v824_v59 = vadd.f32 %v1039_v58, %v1262_v25 }
 0x212   :  { %v815_v60 = vpop.f32.mrf.mxu1 }
 0x213   :  { %881 = vst [vmem:[#allocation9 + $0x90] sm:$0xff] %v824_v59  ;;  %v816_v61 = vadd.f32 %v1262_v25, %v815_v60 }
 0x214   :  { %v1040_v62 = vpop.f32.mrf.mxu1 }
 0x215   :  { %879 = vst [vmem:[#allocation9 + $0x80] sm:$0xff] %v816_v61  ;;  %v827_v63 = vadd.f32 %v1040_v62, %v1262_v25 }
 0x216   :  { %v818_v0 = vpop.f32.mrf.mxu1 }
 0x217   :  { %882 = vst [vmem:[#allocation9 + $0x98] sm:$0xff] %v827_v63  ;;  %v819_v1 = vadd.f32 %v1262_v25, %v818_v0 }
 0x218   :  { %v1043_v2 = vpop.f32.mrf.mxu1 }
 0x219   :  { %880 = vst [vmem:[#allocation9 + $0x88] sm:$0xff] %v819_v1  ;;  %v840_v3 = vadd.f32 %v1043_v2, %v1262_v25 }
 0x21a   :  { %v831_v4 = vpop.f32.mrf.mxu1 }
 0x21b   :  { %885 = vst [vmem:[#allocation9 + $0xb0] sm:$0xff] %v840_v3  ;;  %v832_v5 = vadd.f32 %v1262_v25, %v831_v4 }
 0x21c   :  { %v1044_v6 = vpop.f32.mrf.mxu1 }
 0x21d   :  { %883 = vst [vmem:[#allocation9 + $0xa0] sm:$0xff] %v832_v5  ;;  %v843_v7 = vadd.f32 %v1044_v6, %v1262_v25 }
 0x21e   :  { %v834_v8 = vpop.f32.mrf.mxu1 }
 0x21f   :  { %886 = vst [vmem:[#allocation9 + $0xb8] sm:$0xff] %v843_v7  ;;  %v835_v9 = vadd.f32 %v1262_v25, %v834_v8 }
 0x220   :  { %v1047_v10 = vpop.f32.mrf.mxu1 }
 0x221   :  { %884 = vst [vmem:[#allocation9 + $0xa8] sm:$0xff] %v835_v9  ;;  %v856_v11 = vadd.f32 %v1047_v10, %v1262_v25 }
 0x222   :  { %v847_v12 = vpop.f32.mrf.mxu1 }
 0x223   :  { %889 = vst [vmem:[#allocation9 + $0xd0] sm:$0xff] %v856_v11  ;;  %v848_v13 = vadd.f32 %v1262_v25, %v847_v12 }
 0x224   :  { %v1048_v14 = vpop.f32.mrf.mxu1 }
 0x225   :  { %887 = vst [vmem:[#allocation9 + $0xc0] sm:$0xff] %v848_v13  ;;  %v859_v15 = vadd.f32 %v1048_v14, %v1262_v25 }
 0x226   :  { %v850_v16 = vpop.f32.mrf.mxu1 }
 0x227   :  { %890 = vst [vmem:[#allocation9 + $0xd8] sm:$0xff] %v859_v15  ;;  %v851_v17 = vadd.f32 %v1262_v25, %v850_v16 }
 0x228   :  { %v1051_v18 = vpop.f32.mrf.mxu1 }
 0x229   :  { %888 = vst [vmem:[#allocation9 + $0xc8] sm:$0xff] %v851_v17  ;;  %v872_v19 = vadd.f32 %v1051_v18, %v1262_v25 }
 0x22a   :  { %v863_v20 = vpop.f32.mrf.mxu1 }
 0x22b   :  { %893 = vst [vmem:[#allocation9 + $0xf0] sm:$0xff] %v872_v19  ;;  %v864_v21 = vadd.f32 %v1262_v25, %v863_v20 }
 0x22c   :  { %v1052_v22 = vpop.f32.mrf.mxu1 }
 0x22d   :  { %891 = vst [vmem:[#allocation9 + $0xe0] sm:$0xff] %v864_v21  ;;  %v875_v23 = vadd.f32 %v1052_v22, %v1262_v25 }
 0x22e   :  { %v866_v24 = vpop.f32.mrf.mxu1 }
 0x22f   :  { %894 = vst [vmem:[#allocation9 + $0xf8] sm:$0xff] %v875_v23  ;;  %v867_v26 = vadd.f32 %v1262_v25, %v866_v24 }
 0x231   :  { %892 = vst [vmem:[#allocation9 + $0xe8] sm:$0xff] %v867_v26 }
 0x232   :  { %1181 = shalt.err (!%p1178_p5)
}
 0x233   :  { %906 = dma.vmem_to_hbm [thread:$0]  %s901_s7, 4096, %s1306_s4, [#allocation5], %s1200_s25, %s1200_s25, %s1201_s26  }
 0x234   :  { %1194 = dma.done.wait [#allocation5], 4096  }
 0x235   :  { %1195 = vsyncadd [#allocation5], 4294963200 }
 0x236   :  { %910 = vsyncpa [#allocation4], 1 }
 0x237   :  { %911 = vsyncpa [#allocation7], 1 }
 0x238   :  { %912 = vsyncpa [#allocation5], 1 }

// kernel: tpu_custom_call.1
= control target key start
LH: loop header
LB: loop body
LE: loop exit
PB: predicated region body
PF: predicated region fallthrough
CT: control target
= control target key end

     0   :  { %9 = vsyncpa [#allocation4], 0  ;;  %s1302_s0 = inlined_call_operand.hbm [shape: bf16[128,256], index: 0, kind: input, shape index: {}]   ;;  %s1303_s1 = inlined_call_operand.hbm [shape: bf16[128,128], index: 1, kind: input, shape index: {}]   ;;  %s1304_s2 = inlined_call_operand.hbm [shape: bf16[128,128], index: 2, kind: input, shape index: {}]   ;;  %s1305_s3 = inlined_call_operand.vmem [shape: f32[1,128], index: 3, kind: input, shape index: {}]   ;;  %s1306_s4 = inlined_call_operand.hbm [shape: f32[2,128,128], index: 4, kind: output, shape index: {}]  }
   0x1   :  { %10 = vsyncpa [#allocation7], 0 }
   0x2   :  { %11 = vsyncpa [#allocation5], 0  ;;  %s1196_s15 = smov [#allocation6]  }
   0x3   :  { %s29_s16 = sshll.u32 %s1196_s15, 4  ;;  %s30_s16 = int_to_ptr.vmem [resolvable:$true] %s29_s16 }
   0x4   :  { %s1118_s17 = scalar_lea.vmem %s30_s16, 1024  ;;  %p1123_p1 = scmp.lt.s32.totalorder %s30_s16, %s30_s16 }
   0x5   :  { %p1119_p0 = scmp.ne.s32.totalorder %s30_s16, %s1118_s17  ;;  %p1124_p2 = scmp.lt.s32.totalorder %s1118_s17, %s1118_s17 }
   0x7   :  { %p1125_p3 = por %p1124_p2, %p1123_p1 }
   0x9   :  { %p1126_p4 = pnand %p1125_p3, %p1119_p0 }
   0xb   :  { %1129 = shalt.err (!%p1126_p4)
}
   0xc   :  { %s1197_s18 = smov 64   ;;  %s1198_s19 = smov 4  }
   0xd   :  { %35 = dma.hbm_to_vmem [thread:$0]  %s1303_s1, 1024, %s30_s16, [#allocation7], %s1197_s18, %s1197_s18, %s1198_s19  }
   0xe   :  { %s1199_s22 = smov [#allocation3]  }
   0xf   :  { %s17_s23 = sshll.u32 %s1199_s22, 4  ;;  %s18_s23 = int_to_ptr.vmem [resolvable:$true] %s17_s23 }
  0x10   :  { %s1138_s24 = scalar_lea.vmem %s18_s23, 2048  ;;  %p1143_p6 = scmp.lt.s32.totalorder %s18_s23, %s18_s23 }
  0x11   :  { %p1139_p5 = scmp.ne.s32.totalorder %s18_s23, %s1138_s24  ;;  %p1144_p7 = scmp.lt.s32.totalorder %s1138_s24, %s1138_s24 }
  0x13   :  { %p1145_p8 = por %p1144_p7, %p1143_p6 }
  0x15   :  { %p1146_p9 = pnand %p1145_p8, %p1139_p5 }
  0x17   :  { %1149 = shalt.err (!%p1146_p9)
}
  0x18   :  { %s1200_s25 = smov 128   ;;  %s1201_s26 = smov 8  }
  0x19   :  { %23 = dma.hbm_to_vmem [thread:$0]  %s1302_s0, 2048, %s18_s23, [#allocation4], %s1200_s25, %s1200_s25, %s1201_s26  }
  0x1a   :  { %s1202_s1 = smov [#allocation8]  }
  0x1b   :  { %s41_s29 = sshll.u32 %s1202_s1, 4  ;;  %s42_s29 = int_to_ptr.vmem [resolvable:$true] %s41_s29 }
  0x1c   :  { %s1158_s30 = scalar_lea.vmem %s42_s29, 1024  ;;  %p1163_p11 = scmp.lt.s32.totalorder %s42_s29, %s42_s29 }
  0x1d   :  { %p1159_p10 = scmp.ne.s32.totalorder %s42_s29, %s1158_s30  ;;  %p1164_p12 = scmp.lt.s32.totalorder %s1158_s30, %s1158_s30 }
  0x1f   :  { %p1165_p13 = por %p1164_p12, %p1163_p11 }
  0x21   :  { %p1166_p0 = pnand %p1165_p13, %p1159_p10 }
  0x23   :  { %1169 = shalt.err (!%p1166_p0)
}
  0x24   :  { %47 = dma.hbm_to_vmem [thread:$0]  %s1304_s2, 1024, %s42_s29, [#allocation7], %s1197_s18, %s1197_s18, %s1198_s19  }
  0x25   :  { %1190 = dma.done.wait [#allocation4], 2048  }
  0x26   :  { %1191 = vsyncadd [#allocation4], 4294965248 }
  0x27   :  { %1192 = dma.done.wait [#allocation7], 2048  }
  0x28   :  { %1193 = vsyncadd [#allocation7], 4294965248  ;;  %v1203_v0 = vmov 0   ;;  %v1062_v1 = vld [vmem:[#allocation3 + $0x74] ss:$8 sps:$4 sm:$0xff]   ;;  %v1096_v18 = vld [vmem:[#allocation8 + $0x28] sm:$0xff]  }
  0x29   :  { %258 = vmatprep.mubr.bf16.mxu0 %v1203_v0  ;;  %v1064_v2 = vld [vmem:[#allocation3 + $0x70] ss:$8 sps:$4 sm:$0xff]   ;;  %226 = vmatprep.subr.bf16.mxu0 %v1062_v1  ;;  %v1065_v3 = vld [vmem:[#allocation3 + $0x64] ss:$8 sps:$4 sm:$0xff]   ;;  %v1067_v4 = vld [vmem:[#allocation3 + $0x60] ss:$8 sps:$4 sm:$0xff]  }
  0x2a   :  { %227 = vmatpush1.bf16.msra.mxu0 %v1064_v2  ;;  %v1068_v5 = vld [vmem:[#allocation3 + $0x54] ss:$8 sps:$4 sm:$0xff]   ;;  %v1070_v6 = vld [vmem:[#allocation3 + $0x50] ss:$8 sps:$4 sm:$0xff]   ;;  %v1071_v7 = vld [vmem:[#allocation3 + $0x44] ss:$8 sps:$4 sm:$0xff]  }
  0x2b   :  { %228 = vmatprep.subr.bf16.mxu0 %v1065_v3  ;;  %v1073_v8 = vld [vmem:[#allocation3 + $0x40] ss:$8 sps:$4 sm:$0xff]   ;;  %v1074_v9 = vld [vmem:[#allocation3 + $0x34] ss:$8 sps:$4 sm:$0xff]   ;;  %v1076_v10 = vld [vmem:[#allocation3 + $0x30] ss:$8 sps:$4 sm:$0xff]  }
  0x2c   :  { %v1077_v11 = vld [vmem:[#allocation3 + $0x24] ss:$8 sps:$4 sm:$0xff]   ;;  %v1079_v12 = vld [vmem:[#allocation3 + $0x20] ss:$8 sps:$4 sm:$0xff]   ;;  %v1080_v13 = vld [vmem:[#allocation3 + $0x14] ss:$8 sps:$4 sm:$0xff]  }
  0x2d   :  { %v1094_v14 = vld [vmem:[#allocation8 + $0x38] sm:$0xff]   ;;  %v1095_v15 = vld [vmem:[#allocation8 + $0x30] sm:$0xff]   ;;  %v1083_v17 = vld [vmem:[#allocation3 + $0x4] ss:$8 sps:$4 sm:$0xff]  }
  0x2e   :  { %229 = vmatpush1.bf16.msra.mxu0 %v1067_v4  ;;  %v1082_v16 = vld [vmem:[#allocation3 + $0x10] ss:$8 sps:$4 sm:$0xff]   ;;  %989 = vmatprep.subr.bf16.mxu1 %v1094_v14  ;;  %v1085_v19 = vld [vmem:[#allocation3] ss:$8 sps:$4 sm:$0xff]  }
  0x2f   :  { %230 = vmatprep.subr.bf16.mxu0 %v1068_v5  ;;  %990 = vmatpush3.bf16.msra.mxu1 %v1094_v14  ;;  %v1097_v20 = vld [vmem:[#allocation8 + $0x20] sm:$0xff]   ;;  %v1098_v22 = vld [vmem:[#allocation8 + $0x18] sm:$0xff]   ;;  %v1087_v23 = vld [vmem:[#allocation6 + $0x8] sm:$0xff]  }
  0x30   :  { %991 = vmatprep.subr.bf16.mxu1 %v1095_v15  ;;  %v1086_v21 = vld [vmem:[#allocation6] sm:$0xff]   ;;  %v1088_v24 = vld [vmem:[#allocation6 + $0x10] sm:$0xff]   ;;  %v1089_v25 = vld [vmem:[#allocation6 + $0x18] sm:$0xff]  }
  0x31   :  { %v1090_v26 = vld [vmem:[#allocation6 + $0x20] sm:$0xff]   ;;  %v1091_v27 = vld [vmem:[#allocation6 + $0x28] sm:$0xff]   ;;  %v1092_v28 = vld [vmem:[#allocation6 + $0x30] sm:$0xff]  }
  0x32   :  { %231 = vmatpush1.bf16.msra.mxu0 %v1070_v6  ;;  %v1093_v29 = vld [vmem:[#allocation6 + $0x38] sm:$0xff]   ;;  %v1099_v30 = vld [vmem:[#allocation8 + $0x10] sm:$0xff]   ;;  %v1100_v31 = vld [vmem:[#allocation8 + $0x8] sm:$0xff]  }
  0x33   :  { %232 = vmatprep.subr.bf16.mxu0 %v1071_v7  ;;  %992 = vmatpush3.bf16.msra.mxu1 %v1095_v15  ;;  %v1101_v32 = vld [vmem:[#allocation8] sm:$0xff]   ;;  %v1102_v33 = vld [vmem:[#allocation8 + $0x38] sm:$0xff]   ;;  %v1103_v43 = vld [vmem:[#allocation8 + $0x30] sm:$0xff]  }
  0x34   :  { %993 = vmatprep.subr.bf16.mxu1 %v1096_v18  ;;  %v1104_v46 = vld [vmem:[#allocation8 + $0x28] sm:$0xff]   ;;  %v1105_v50 = vld [vmem:[#allocation8 + $0x20] sm:$0xff]   ;;  %v1106_v53 = vld [vmem:[#allocation8 + $0x18] sm:$0xff]  }
  0x35   :  { %v1107_v57 = vld [vmem:[#allocation8 + $0x10] sm:$0xff]   ;;  %v1108_v60 = vld [vmem:[#allocation8 + $0x8] sm:$0xff]  }
  0x36   :  { %233 = vmatpush1.bf16.msra.mxu0 %v1073_v8 }
  0x37   :  { %234 = vmatprep.subr.bf16.mxu0 %v1074_v9  ;;  %994 = vmatpush3.bf16.msra.mxu1 %v1096_v18 }
  0x38   :  { %995 = vmatprep.subr.bf16.mxu1 %v1097_v20 }
  0x3a   :  { %235 = vmatpush1.bf16.msra.mxu0 %v1076_v10 }
  0x3b   :  { %236 = vmatprep.subr.bf16.mxu0 %v1077_v11  ;;  %996 = vmatpush3.bf16.msra.mxu1 %v1097_v20 }
  0x3c   :  { %997 = vmatprep.subr.bf16.mxu1 %v1098_v22 }
  0x3e   :  { %237 = vmatpush1.bf16.msra.mxu0 %v1079_v12 }
  0x3f   :  { %238 = vmatprep.subr.bf16.mxu0 %v1080_v13  ;;  %998 = vmatpush3.bf16.msra.mxu1 %v1098_v22 }
  0x40   :  { %999 = vmatprep.subr.bf16.mxu1 %v1099_v30 }
  0x42   :  { %239 = vmatpush1.bf16.msra.mxu0 %v1082_v16 }
  0x43   :  { %240 = vmatprep.subr.bf16.mxu0 %v1083_v17  ;;  %1000 = vmatpush3.bf16.msra.mxu1 %v1099_v30 }
  0x44   :  { %1001 = vmatprep.subr.bf16.mxu1 %v1100_v31 }
  0x46   :  { %241 = vmatpush1.bf16.msra.mxu0 %v1085_v19 }
  0x47   :  { %1002 = vmatpush3.bf16.msra.mxu1 %v1100_v31 }
  0x48   :  { %1003 = vmatprep.subr.bf16.mxu1 %v1101_v32 }
  0x49   :  { %259 = vmatmul.mubr.bf16.vlgmr.msra.gmra.mxu0 %v1086_v21 }
  0x4a   :  { %268 = vmatprep.mubr.bf16.mxu0 %v1203_v0 }
  0x4b   :  { %1004 = vmatpush3.bf16.msra.mxu1 %v1101_v32 }
  0x4c   :  { %1021 = vmatprep.subr.bf16.mxu1 %v1102_v33 }
  0x51   :  { %269 = vmatmul.mubr.bf16.gmra.mxu0 %v1087_v23 }
  0x52   :  { %278 = vmatprep.mubr.bf16.mxu0 %v1203_v0 }
  0x59   :  { %279 = vmatmul.mubr.bf16.gmra.mxu0 %v1088_v24 }
  0x5a   :  { %288 = vmatprep.mubr.bf16.mxu0 %v1203_v0 }
  0x61   :  { %289 = vmatmul.mubr.bf16.gmra.mxu0 %v1089_v25  ;;  %v1262_v25 = vld [vmem:[%s1305_s3] ss:$0 sm:$0xff]  ;;  %s1204_s3 = smov [#allocation9]  }
  0x62   :  { %298 = vmatprep.mubr.bf16.mxu0 %v1203_v0  ;;  %s900_s7 = sshll.u32 %s1204_s3, 4  ;;  %s901_s7 = int_to_ptr.vmem [resolvable:$true] %s900_s7 }
  0x63   :  { %s1170_s8 = scalar_lea.vmem %s901_s7, 4096  ;;  %p1175_p2 = scmp.lt.s32.totalorder %s901_s7, %s901_s7 }
  0x64   :  { %p1171_p1 = scmp.ne.s32.totalorder %s901_s7, %s1170_s8  ;;  %p1176_p3 = scmp.lt.s32.totalorder %s1170_s8, %s1170_s8 }
  0x66   :  { %p1177_p4 = por %p1176_p3, %p1175_p2 }
  0x68   :  { %p1178_p5 = pnand %p1177_p4, %p1171_p1 }
  0x69   :  { %299 = vmatmul.mubr.bf16.gmra.mxu0 %v1090_v26 }
  0x6a   :  { %308 = vmatprep.mubr.bf16.mxu0 %v1203_v0 }
  0x71   :  { %309 = vmatmul.mubr.bf16.gmra.mxu0 %v1091_v27 }
  0x72   :  { %318 = vmatprep.mubr.bf16.mxu0 %v1203_v0 }
  0x79   :  { %319 = vmatmul.mubr.bf16.gmra.mxu0 %v1092_v28 }
  0x7a   :  { %328 = vmatprep.mubr.bf16.mxu0 %v1203_v0  ;;  %v1109_v0 = vld [vmem:[#allocation8] sm:$0xff]  }
  0x81   :  { %329 = vmatmul.mubr.bf16.gmra.mxu0 %v1093_v29 }
 0x109   :  { %v260_v34 = vpop.f32.mrf.mxu0 }
 0x10b   :  { %v1250_v35 = vpop.f32.mrf.mxu0 }
 0x10d   :  { %v264_v36 = vpop.f32.mrf.mxu0 }
 0x10e   :  { %v494_v37 = vpack.c.bf16 %v264_v36, %v260_v34 }
 0x10f   :  { %v1252_v38 = vpop.f32.mrf.mxu0 }
 0x110   :  { %1005 = vmatprep.mubr.bf16.mxu1 %v494_v37  ;;  %v702_v16 = vpack.c.bf16 %v1252_v38, %v1250_v35 }
 0x111   :  { %v270_v39 = vpop.f32.mrf.mxu0 }
 0x113   :  { %v1254_v40 = vpop.f32.mrf.mxu0 }
 0x115   :  { %v274_v41 = vpop.f32.mrf.mxu0 }
 0x116   :  { %v495_v42 = vpack.c.bf16 %v274_v41, %v270_v39 }
 0x117   :  { %v276_v44 = vpop.f32.mrf.mxu0 }
 0x118   :  { %1006 = vmatmul.mubr.bf16.vlgmr.msra.gmra.mxu1 %v495_v42  ;;  %v703_v17 = vpack.c.bf16 %v276_v44, %v1254_v40 }
 0x119   :  { %v280_v45 = vpop.f32.mrf.mxu0  ;;  %1022 = vmatpush3.bf16.msra.mxu1 %v1102_v33 }
 0x11a   :  { %1023 = vmatprep.subr.bf16.mxu1 %v1103_v43 }
 0x11b   :  { %v282_v47 = vpop.f32.mrf.mxu0 }
 0x11d   :  { %v284_v48 = vpop.f32.mrf.mxu0  ;;  %1024 = vmatpush3.bf16.msra.mxu1 %v1103_v43 }
 0x11e   :  { %v496_v49 = vpack.c.bf16 %v284_v48, %v280_v45  ;;  %1025 = vmatprep.subr.bf16.mxu1 %v1104_v46 }
 0x11f   :  { %v286_v51 = vpop.f32.mrf.mxu0 }
 0x120   :  { %1009 = vmatprep.mubr.bf16.mxu1 %v496_v49  ;;  %v704_v18 = vpack.c.bf16 %v286_v51, %v282_v47 }
 0x121   :  { %v290_v52 = vpop.f32.mrf.mxu0  ;;  %1026 = vmatpush3.bf16.msra.mxu1 %v1104_v46 }
 0x122   :  { %1027 = vmatprep.subr.bf16.mxu1 %v1105_v50 }
 0x123   :  { %v292_v54 = vpop.f32.mrf.mxu0 }
 0x125   :  { %v294_v55 = vpop.f32.mrf.mxu0  ;;  %1028 = vmatpush3.bf16.msra.mxu1 %v1105_v50 }
 0x126   :  { %v497_v56 = vpack.c.bf16 %v294_v55, %v290_v52  ;;  %1029 = vmatprep.subr.bf16.mxu1 %v1106_v53 }
 0x127   :  { %v296_v58 = vpop.f32.mrf.mxu0 }
 0x128   :  { %1010 = vmatmul.mubr.bf16.gmra.mxu1 %v497_v56  ;;  %v705_v19 = vpack.c.bf16 %v296_v58, %v292_v54 }
 0x129   :  { %v300_v59 = vpop.f32.mrf.mxu0  ;;  %1030 = vmatpush3.bf16.msra.mxu1 %v1106_v53 }
 0x12a   :  { %1031 = vmatprep.subr.bf16.mxu1 %v1107_v57 }
 0x12b   :  { %v302_v61 = vpop.f32.mrf.mxu0 }
 0x12d   :  { %v304_v62 = vpop.f32.mrf.mxu0  ;;  %1032 = vmatpush3.bf16.msra.mxu1 %v1107_v57 }
 0x12e   :  { %v498_v63 = vpack.c.bf16 %v304_v62, %v300_v59  ;;  %1033 = vmatprep.subr.bf16.mxu1 %v1108_v60 }
 0x12f   :  { %v306_v1 = vpop.f32.mrf.mxu0 }
 0x130   :  { %1013 = vmatprep.mubr.bf16.mxu1 %v498_v63  ;;  %v706_v20 = vpack.c.bf16 %v306_v1, %v302_v61 }
 0x131   :  { %v310_v2 = vpop.f32.mrf.mxu0  ;;  %1034 = vmatpush3.bf16.msra.mxu1 %v1108_v60 }
 0x132   :  { %1035 = vmatprep.subr.bf16.mxu1 %v1109_v0 }
 0x133   :  { %v312_v3 = vpop.f32.mrf.mxu0 }
 0x135   :  { %v314_v4 = vpop.f32.mrf.mxu0  ;;  %1036 = vmatpush3.bf16.msra.mxu1 %v1109_v0 }
 0x136   :  { %v499_v5 = vpack.c.bf16 %v314_v4, %v310_v2 }
 0x137   :  { %v316_v6 = vpop.f32.mrf.mxu0 }
 0x138   :  { %1014 = vmatmul.mubr.bf16.gmra.mxu1 %v499_v5  ;;  %v707_v21 = vpack.c.bf16 %v316_v6, %v312_v3 }
 0x139   :  { %v320_v7 = vpop.f32.mrf.mxu0 }
 0x13b   :  { %v322_v8 = vpop.f32.mrf.mxu0 }
 0x13d   :  { %v324_v9 = vpop.f32.mrf.mxu0 }
 0x13e   :  { %v500_v10 = vpack.c.bf16 %v324_v9, %v320_v7 }
 0x13f   :  { %v326_v11 = vpop.f32.mrf.mxu0 }
 0x140   :  { %1017 = vmatprep.mubr.bf16.mxu1 %v500_v10  ;;  %v708_v22 = vpack.c.bf16 %v326_v11, %v322_v8 }
 0x141   :  { %v330_v12 = vpop.f32.mrf.mxu0 }
 0x143   :  { %v332_v13 = vpop.f32.mrf.mxu0 }
 0x145   :  { %v334_v14 = vpop.f32.mrf.mxu0 }
 0x146   :  { %v501_v15 = vpack.c.bf16 %v334_v14, %v330_v12 }
 0x147   :  { %v336_v23 = vpop.f32.mrf.mxu0 }
 0x148   :  { %1018 = vmatmul.mubr.bf16.gmra.mxu1 %v501_v15  ;;  %v709_v24 = vpack.c.bf16 %v336_v23, %v332_v13 }
 0x149   :  { %1037 = vmatprep.mubr.bf16.mxu1 %v702_v16 }
 0x150   :  { %1038 = vmatmul.mubr.bf16.vlgmr.msra.gmra.mxu1 %v703_v17 }
 0x151   :  { %1041 = vmatprep.mubr.bf16.mxu1 %v704_v18 }
 0x158   :  { %1042 = vmatmul.mubr.bf16.gmra.mxu1 %v705_v19 }
 0x159   :  { %1045 = vmatprep.mubr.bf16.mxu1 %v706_v20 }
 0x160   :  { %1046 = vmatmul.mubr.bf16.gmra.mxu1 %v707_v21 }
 0x161   :  { %1049 = vmatprep.mubr.bf16.mxu1 %v708_v22 }
 0x168   :  { %1050 = vmatmul.mubr.bf16.gmra.mxu1 %v709_v24 }
 0x1d8   :  { %v1007_v26 = vpop.f32.mrf.mxu1 }
 0x1d9   :  { %v616_v27 = vadd.f32 %v1007_v26, %v1262_v25 }
 0x1da   :  { %v607_v28 = vpop.f32.mrf.mxu1 }
 0x1db   :  { %672 = vst [vmem:[#allocation9 + $0x10] sm:$0xff] %v616_v27  ;;  %v608_v29 = vadd.f32 %v1262_v25, %v607_v28 }
 0x1dc   :  { %v1008_v30 = vpop.f32.mrf.mxu1 }
 0x1dd   :  { %670 = vst [vmem:[#allocation9] sm:$0xff] %v608_v29  ;;  %v619_v31 = vadd.f32 %v1008_v30, %v1262_v25 }
 0x1de   :  { %v610_v32 = vpop.f32.mrf.mxu1 }
 0x1df   :  { %673 = vst [vmem:[#allocation9 + $0x18] sm:$0xff] %v619_v31  ;;  %v611_v33 = vadd.f32 %v1262_v25, %v610_v32 }
 0x1e1   :  { %671 = vst [vmem:[#allocation9 + $0x8] sm:$0xff] %v611_v33 }
 0x1e8   :  { %v1011_v34 = vpop.f32.mrf.mxu1 }
 0x1e9   :  { %v632_v35 = vadd.f32 %v1011_v34, %v1262_v25 }
 0x1ea   :  { %v623_v36 = vpop.f32.mrf.mxu1 }
 0x1eb   :  { %676 = vst [vmem:[#allocation9 + $0x30] sm:$0xff] %v632_v35  ;;  %v624_v37 = vadd.f32 %v1262_v25, %v623_v36 }
 0x1ec   :  { %v1012_v38 = vpop.f32.mrf.mxu1 }
 0x1ed   :  { %674 = vst [vmem:[#allocation9 + $0x20] sm:$0xff] %v624_v37  ;;  %v635_v39 = vadd.f32 %v1012_v38, %v1262_v25 }
 0x1ee   :  { %v626_v40 = vpop.f32.mrf.mxu1 }
 0x1ef   :  { %677 = vst [vmem:[#allocation9 + $0x38] sm:$0xff] %v635_v39  ;;  %v627_v41 = vadd.f32 %v1262_v25, %v626_v40 }
 0x1f1   :  { %675 = vst [vmem:[#allocation9 + $0x28] sm:$0xff] %v627_v41 }
 0x1f8   :  { %v1015_v42 = vpop.f32.mrf.mxu1 }
 0x1f9   :  { %v648_v43 = vadd.f32 %v1015_v42, %v1262_v25 }
 0x1fa   :  { %v639_v44 = vpop.f32.mrf.mxu1 }
 0x1fb   :  { %680 = vst [vmem:[#allocation9 + $0x50] sm:$0xff] %v648_v43  ;;  %v640_v45 = vadd.f32 %v1262_v25, %v639_v44 }
 0x1fc   :  { %v1016_v46 = vpop.f32.mrf.mxu1 }
 0x1fd   :  { %678 = vst [vmem:[#allocation9 + $0x40] sm:$0xff] %v640_v45  ;;  %v651_v47 = vadd.f32 %v1016_v46, %v1262_v25 }
 0x1fe   :  { %v642_v48 = vpop.f32.mrf.mxu1 }
 0x1ff   :  { %681 = vst [vmem:[#allocation9 + $0x58] sm:$0xff] %v651_v47  ;;  %v643_v49 = vadd.f32 %v1262_v25, %v642_v48 }
 0x201   :  { %679 = vst [vmem:[#allocation9 + $0x48] sm:$0xff] %v643_v49 }
 0x208   :  { %v1019_v50 = vpop.f32.mrf.mxu1 }
 0x209   :  { %v664_v51 = vadd.f32 %v1019_v50, %v1262_v25 }
 0x20a   :  { %v655_v52 = vpop.f32.mrf.mxu1 }
 0x20b   :  { %684 = vst [vmem:[#allocation9 + $0x70] sm:$0xff] %v664_v51  ;;  %v656_v53 = vadd.f32 %v1262_v25, %v655_v52 }
 0x20c   :  { %v1020_v54 = vpop.f32.mrf.mxu1 }
 0x20d   :  { %682 = vst [vmem:[#allocation9 + $0x60] sm:$0xff] %v656_v53  ;;  %v667_v55 = vadd.f32 %v1020_v54, %v1262_v25 }
 0x20e   :  { %v658_v56 = vpop.f32.mrf.mxu1 }
 0x20f   :  { %685 = vst [vmem:[#allocation9 + $0x78] sm:$0xff] %v667_v55  ;;  %v659_v57 = vadd.f32 %v1262_v25, %v658_v56 }
 0x210   :  { %v1039_v58 = vpop.f32.mrf.mxu1 }
 0x211   :  { %683 = vst [vmem:[#allocation9 + $0x68] sm:$0xff] %v659_v57  ;;  %v824_v59 = vadd.f32 %v1039_v58, %v1262_v25 }
 0x212   :  { %v815_v60 = vpop.f32.mrf.mxu1 }
 0x213   :  { %881 = vst [vmem:[#allocation9 + $0x90] sm:$0xff] %v824_v59  ;;  %v816_v61 = vadd.f32 %v1262_v25, %v815_v60 }
 0x214   :  { %v1040_v62 = vpop.f32.mrf.mxu1 }
 0x215   :  { %879 = vst [vmem:[#allocation9 + $0x80] sm:$0xff] %v816_v61  ;;  %v827_v63 = vadd.f32 %v1040_v62, %v1262_v25 }
 0x216   :  { %v818_v0 = vpop.f32.mrf.mxu1 }
 0x217   :  { %882 = vst [vmem:[#allocation9 + $0x98] sm:$0xff] %v827_v63  ;;  %v819_v1 = vadd.f32 %v1262_v25, %v818_v0 }
 0x218   :  { %v1043_v2 = vpop.f32.mrf.mxu1 }
 0x219   :  { %880 = vst [vmem:[#allocation9 + $0x88] sm:$0xff] %v819_v1  ;;  %v840_v3 = vadd.f32 %v1043_v2, %v1262_v25 }
 0x21a   :  { %v831_v4 = vpop.f32.mrf.mxu1 }
 0x21b   :  { %885 = vst [vmem:[#allocation9 + $0xb0] sm:$0xff] %v840_v3  ;;  %v832_v5 = vadd.f32 %v1262_v25, %v831_v4 }
 0x21c   :  { %v1044_v6 = vpop.f32.mrf.mxu1 }
 0x21d   :  { %883 = vst [vmem:[#allocation9 + $0xa0] sm:$0xff] %v832_v5  ;;  %v843_v7 = vadd.f32 %v1044_v6, %v1262_v25 }
 0x21e   :  { %v834_v8 = vpop.f32.mrf.mxu1 }
 0x21f   :  { %886 = vst [vmem:[#allocation9 + $0xb8] sm:$0xff] %v843_v7  ;;  %v835_v9 = vadd.f32 %v1262_v25, %v834_v8 }
 0x220   :  { %v1047_v10 = vpop.f32.mrf.mxu1 }
 0x221   :  { %884 = vst [vmem:[#allocation9 + $0xa8] sm:$0xff] %v835_v9  ;;  %v856_v11 = vadd.f32 %v1047_v10, %v1262_v25 }
 0x222   :  { %v847_v12 = vpop.f32.mrf.mxu1 }
 0x223   :  { %889 = vst [vmem:[#allocation9 + $0xd0] sm:$0xff] %v856_v11  ;;  %v848_v13 = vadd.f32 %v1262_v25, %v847_v12 }
 0x224   :  { %v1048_v14 = vpop.f32.mrf.mxu1 }
 0x225   :  { %887 = vst [vmem:[#allocation9 + $0xc0] sm:$0xff] %v848_v13  ;;  %v859_v15 = vadd.f32 %v1048_v14, %v1262_v25 }
 0x226   :  { %v850_v16 = vpop.f32.mrf.mxu1 }
 0x227   :  { %890 = vst [vmem:[#allocation9 + $0xd8] sm:$0xff] %v859_v15  ;;  %v851_v17 = vadd.f32 %v1262_v25, %v850_v16 }
 0x228   :  { %v1051_v18 = vpop.f32.mrf.mxu1 }
 0x229   :  { %888 = vst [vmem:[#allocation9 + $0xc8] sm:$0xff] %v851_v17  ;;  %v872_v19 = vadd.f32 %v1051_v18, %v1262_v25 }
 0x22a   :  { %v863_v20 = vpop.f32.mrf.mxu1 }
 0x22b   :  { %893 = vst [vmem:[#allocation9 + $0xf0] sm:$0xff] %v872_v19  ;;  %v864_v21 = vadd.f32 %v1262_v25, %v863_v20 }
 0x22c   :  { %v1052_v22 = vpop.f32.mrf.mxu1 }
 0x22d   :  { %891 = vst [vmem:[#allocation9 + $0xe0] sm:$0xff] %v864_v21  ;;  %v875_v23 = vadd.f32 %v1052_v22, %v1262_v25 }
 0x22e   :  { %v866_v24 = vpop.f32.mrf.mxu1 }
 0x22f   :  { %894 = vst [vmem:[#allocation9 + $0xf8] sm:$0xff] %v875_v23  ;;  %v867_v26 = vadd.f32 %v1262_v25, %v866_v24 }
 0x231   :  { %892 = vst [vmem:[#allocation9 + $0xe8] sm:$0xff] %v867_v26 }
 0x232   :  { %1181 = shalt.err (!%p1178_p5)
}
 0x233   :  { %906 = dma.vmem_to_hbm [thread:$0]  %s901_s7, 4096, %s1306_s4, [#allocation5], %s1200_s25, %s1200_s25, %s1201_s26  }
 0x234   :  { %1194 = dma.done.wait [#allocation5], 4096  }
 0x235   :  { %1195 = vsyncadd [#allocation5], 4294963200 }
 0x236   :  { %910 = vsyncpa [#allocation4], 1 }
 0x237   :  { %911 = vsyncpa [#allocation7], 1 }
 0x238   :  { %912 = vsyncpa [#allocation5], 1 }

</bundles_post_ra>
